<compile_context>
chip_gen: v5e
topology: v5e:2x2
jax: 0.10.0
libtpu: 0.0.40
codegen_flags: <defaults>
</compile_context>

<pallas_src>
import functools

import jax
import jax.numpy as jnp
from jax.experimental import pallas as pl
from jax.experimental.pallas import tpu as pltpu


def _round_up(a, b):
    return ((a + b - 1) // b) * b


def _decoder_kernel(eidx_ref, xt_ref, w0_ref, b0_ref, w1_ref, b1_ref,
                    w2_ref, b2_ref, o_ref, *, gather, apply_sigmoid):
    x_t = xt_ref[...]                     # (H, N) node features, nodes on lanes
    idx = eidx_ref[...]                   # (2, tile_e) int32 edge endpoints
    idx_a = idx[0]                        # (tile_e,)
    idx_b = idx[1]                        # (tile_e,)

    if gather == "take":
        # Vectorized in-VMEM gather along the lane (node) axis.
        za = jnp.take(x_t, idx_a, axis=1)                       # (H, tile_e)
        zb = jnp.take(x_t, idx_b, axis=1)                       # (H, tile_e)
    else:  # "onehot": gather expressed as x_t @ one_hot -> always lowers (MXU)
        n_nodes = x_t.shape[1]
        tile_e = idx_a.shape[0]
        node_ids = jax.lax.broadcasted_iota(jnp.int32, (n_nodes, tile_e), 0)
        oh_a = (node_ids == idx_a[None, :]).astype(x_t.dtype)   # (N, tile_e)
        oh_b = (node_ids == idx_b[None, :]).astype(x_t.dtype)
        za = jnp.dot(x_t, oh_a, preferred_element_type=jnp.float32)
        zb = jnp.dot(x_t, oh_b, preferred_element_type=jnp.float32)

    # z = x[src] * x[dst]   (transposed: (H, tile_e))
    z = za * zb
    # Hidden layers: relu(W @ z + b), weights kept in PyTorch (out, in) layout.
    z = jnp.maximum(
        jnp.dot(w0_ref[...], z, preferred_element_type=jnp.float32) + b0_ref[...],
        0.0)
    z = jnp.maximum(
        jnp.dot(w1_ref[...], z, preferred_element_type=jnp.float32) + b1_ref[...],
        0.0)
    # Final out_dim=1 layer on the VPU + sublane reduce -> lane-dense (1, tile_e).
    out = jnp.sum(z * w2_ref[...], axis=0, keepdims=True) + b2_ref[...]
    if apply_sigmoid:
        out = jax.nn.sigmoid(out)
    o_ref[...] = out.astype(o_ref.dtype)


def _decoder_call(eidx, x_t, w0, b0c, w1, b1c, w2c, b2c, *, out_dtype,
                  sigmoid, tile_e, gather):
    H, _ = x_t.shape
    e_pad = eidx.shape[1]
    grid = (e_pad // tile_e,)

    full = lambda a: pl.BlockSpec(a.shape, lambda i: (0, 0))
    kernel = functools.partial(_decoder_kernel, gather=gather,
                               apply_sigmoid=sigmoid)

    flops = int(e_pad) * (4 * H * H + 6 * H)
    bytes_accessed = int(
        eidx.size * 4 + x_t.size * 4 + w0.size * 4 + w1.size * 4
        + b0c.size * 4 + b1c.size * 4 + w2c.size * 4 + b2c.size * 4 + e_pad * 4)

    return pl.pallas_call(
        kernel,
        out_shape=jax.ShapeDtypeStruct((1, e_pad), out_dtype),
        grid_spec=pltpu.PrefetchScalarGridSpec(
            num_scalar_prefetch=0,
            grid=grid,
            in_specs=[
                pl.BlockSpec((2, tile_e), lambda i: (0, i)),  # edge_index tile
                full(x_t),                                    # node table, VMEM resident
                full(w0), full(b0c),
                full(w1), full(b1c),
                full(w2c), full(b2c),
            ],
            out_specs=pl.BlockSpec((1, tile_e), lambda i: (0, i)),  # lane-dense
        ),
        compiler_params=pltpu.CompilerParams(
            dimension_semantics=("parallel",)),   # v7x: shard edge grid on 2 TCs
        cost_estimate=pl.CostEstimate(
            flops=flops,
            transcendentals=int(e_pad) if sigmoid else 0,
            bytes_accessed=bytes_accessed),
    )(eidx, x_t, w0, b0c, w1, b1c, w2c, b2c)


def link_predictor_decoder(x, edge_index, params, *, sigmoid=True, tile_e=1024,
                           gather="auto"):
    """params = [w0, b0, w1, b1, w2, b2] in PyTorch Linear layout: w_i (out, in), b_i (out,)."""
    w0, b0, w1, b1, w2, b2 = params
    _, H = x.shape
    E = edge_index.shape[1]
    out_dim = w2.shape[0]
    assert out_dim == 1, "decoder emits a single score per edge"

    # One-off layout plumbing (tiny, not per-edge work): transposed node table and
    # column-shaped biases / final weight so the kernel runs edge-on-lanes.
    x_t = x.T                               # (H, N)
    b0c = b0.reshape(H, 1)
    b1c = b1.reshape(H, 1)
    w2c = w2.reshape(H, 1)                  # (1, H) -> (H, 1)
    b2c = b2.reshape(1, 1)

    # Pick an effective tile and pad edges to a multiple of it (padded edges
    # gather node 0, are computed, and sliced off below).
    assert tile_e % 128 == 0, "tile_e must be a multiple of 128 (lane width)"
    tile_e = max(128, min(tile_e, _round_up(E, 128)))
    e_pad = _round_up(E, tile_e)
    eidx = edge_index.astype(jnp.int32)
    if e_pad != E:
        eidx = jnp.pad(eidx, ((0, 0), (0, e_pad - E)))

    args = (eidx, x_t, w0, b0c, w1, b1c, w2c, b2c)
    kwargs = dict(out_dtype=x.dtype, sigmoid=sigmoid, tile_e=tile_e)
    if gather == "auto":
        try:
            out = _decoder_call(*args, gather="take", **kwargs)
        except Exception:
            # This JAX build cannot lower the in-kernel jnp.take gather; use the
            # one-hot-matmul gather (numerically identical, still fused in-kernel).
            out = _decoder_call(*args, gather="onehot", **kwargs)
    else:
        out = _decoder_call(*args, gather=gather, **kwargs)

    return out[0, :E].reshape(E, out_dim)


def init_params(key, hidden_dim, out_dim=1):
    """Deterministic init matching nn.Linear (PyTorch layout: w (out, in), b (out,))."""
    layer_dims = [(hidden_dim, hidden_dim),   # lins[0]
                  (hidden_dim, hidden_dim),   # lins[1]  (num_layers - 2 == 1)
                  (out_dim, hidden_dim)]      # lins[-1]
    params = []
    for (dout, din) in layer_dims:
        key, kw, kb = jax.random.split(key, 3)
        bound = 1.0 / (din ** 0.5)
        w = jax.random.uniform(kw, (dout, din), jnp.float32, -bound, bound)
        b = jax.random.uniform(kb, (dout,), jnp.float32, -bound, bound)
        params += [w, b]
    return params


def reference(x, edge_index, params, sigmoid=True):
    w0, b0, w1, b1, w2, b2 = params
    z = x[edge_index[0]] * x[edge_index[1]]
    z = jnp.maximum(z @ w0.T + b0, 0.0)
    z = jnp.maximum(z @ w1.T + b1, 0.0)
    z = z @ w2.T + b2
    return jax.nn.sigmoid(z) if sigmoid else z


if __name__ == "__main__":
    key = jax.random.PRNGKey(0)
    k_x, k_e, k_p = jax.random.split(key, 3)

    num_nodes = 16
    hidden_dim = 32       # config['hidden_dim']
    num_edges = 128

    x = jax.random.normal(k_x, (num_nodes, hidden_dim), jnp.float32)
    edge_index = jax.random.randint(k_e, (2, num_edges), 0, num_nodes, jnp.int32)
    params = init_params(k_p, hidden_dim, out_dim=1)

    out = link_predictor_decoder(x, edge_index, params, sigmoid=True)
    out = jax.block_until_ready(out)

    ref = reference(x, edge_index, params, sigmoid=True)
    assert out.shape == (num_edges, 1)
    assert jnp.allclose(out, ref, atol=1e-5, rtol=1e-5)

    print("KERNEL_OK")
</pallas_src>

<mosaic_0001>
module attributes {stable_mosaic.version = 11 : i64} {
  func.func @_decoder_kernel(%arg0: i32, %arg1: memref<2x128xi32, #tpu.memory_space<vmem>>, %arg2: memref<32x16xf32, #tpu.memory_space<vmem>>, %arg3: memref<32x32xf32, #tpu.memory_space<vmem>>, %arg4: memref<32x1xf32, #tpu.memory_space<vmem>>, %arg5: memref<32x32xf32, #tpu.memory_space<vmem>>, %arg6: memref<32x1xf32, #tpu.memory_space<vmem>>, %arg7: memref<32x1xf32, #tpu.memory_space<vmem>>, %arg8: memref<1x1xf32, #tpu.memory_space<vmem>>, %arg9: memref<1x128xf32, #tpu.memory_space<vmem>>) attributes {dimension_semantics = [#tpu.dimension_semantics<parallel>], iteration_bounds = array<i64: 1>, scalar_prefetch = 0 : i64, scratch_operands = 0 : i64, tpu.core_type = #tpu.core_type<tc>, window_params = [{transform_indices = @transform_0, window_bounds = array<i64: 2, 128>}, {pipeline_mode = #tpu.pipeline_mode<synchronous>, transform_indices = @transform_1, window_bounds = array<i64: 32, 16>}, {pipeline_mode = #tpu.pipeline_mode<synchronous>, transform_indices = @transform_2, window_bounds = array<i64: 32, 32>}, {pipeline_mode = #tpu.pipeline_mode<synchronous>, transform_indices = @transform_3, window_bounds = array<i64: 32, 1>}, {pipeline_mode = #tpu.pipeline_mode<synchronous>, transform_indices = @transform_4, window_bounds = array<i64: 32, 32>}, {pipeline_mode = #tpu.pipeline_mode<synchronous>, transform_indices = @transform_5, window_bounds = array<i64: 32, 1>}, {pipeline_mode = #tpu.pipeline_mode<synchronous>, transform_indices = @transform_6, window_bounds = array<i64: 32, 1>}, {pipeline_mode = #tpu.pipeline_mode<synchronous>, transform_indices = @transform_7, window_bounds = array<i64: 1, 1>}, {transform_indices = @transform_8, window_bounds = array<i64: 1, 128>}]} {
    %c0 = arith.constant 0 : index
    %c0_0 = arith.constant 0 : index
    %0 = vector.load %arg2[%c0, %c0_0] : memref<32x16xf32, #tpu.memory_space<vmem>>, vector<32x16xf32>
    %c0_1 = arith.constant 0 : index
    %c0_2 = arith.constant 0 : index
    %1 = vector.load %arg1[%c0_1, %c0_2] : memref<2x128xi32, #tpu.memory_space<vmem>>, vector<2x128xi32>
    %2 = vector.extract_strided_slice %1 {offsets = [0, 0], sizes = [1, 128], strides = [1, 1]} : vector<2x128xi32> to vector<1x128xi32>
    %3 = vector.shape_cast %2 : vector<1x128xi32> to vector<128xi32>
    %4 = vector.extract_strided_slice %1 {offsets = [1, 0], sizes = [1, 128], strides = [1, 1]} : vector<2x128xi32> to vector<1x128xi32>
    %5 = vector.shape_cast %4 : vector<1x128xi32> to vector<128xi32>
    %6 = tpu.iota {dimensions = array<i32: 0>} : vector<16x128xi32>
    %7 = vector.shape_cast %3 : vector<128xi32> to vector<1x128xi32>
    %8 = vector.broadcast %7 : vector<1x128xi32> to vector<16x128xi32>
    %9 = arith.cmpi eq, %6, %8 : vector<16x128xi32>
    %10 = arith.extui %9 : vector<16x128xi1> to vector<16x128xi32>
    %11 = arith.sitofp %10 : vector<16x128xi32> to vector<16x128xf32>
    %12 = vector.shape_cast %5 : vector<128xi32> to vector<1x128xi32>
    %13 = vector.broadcast %12 : vector<1x128xi32> to vector<16x128xi32>
    %14 = arith.cmpi eq, %6, %13 : vector<16x128xi32>
    %15 = arith.extui %14 : vector<16x128xi1> to vector<16x128xi32>
    %16 = arith.sitofp %15 : vector<16x128xi32> to vector<16x128xf32>
    %cst = arith.constant dense<0.000000e+00> : vector<32x128xf32>
    %17 = tpu.matmul %0, %11, %cst {dimension_numbers = #tpu.dot_dimension_numbers<[1], [0], [0], [1], [0, 0, 1, 1], [], []>} : vector<32x16xf32>, vector<16x128xf32>, vector<32x128xf32> -> vector<32x128xf32>
    %cst_3 = arith.constant dense<0.000000e+00> : vector<32x128xf32>
    %18 = tpu.matmul %0, %16, %cst_3 {dimension_numbers = #tpu.dot_dimension_numbers<[1], [0], [0], [1], [0, 0, 1, 1], [], []>} : vector<32x16xf32>, vector<16x128xf32>, vector<32x128xf32> -> vector<32x128xf32>
    %19 = arith.mulf %17, %18 : vector<32x128xf32>
    %c0_4 = arith.constant 0 : index
    %c0_5 = arith.constant 0 : index
    %20 = vector.load %arg3[%c0_4, %c0_5] : memref<32x32xf32, #tpu.memory_space<vmem>>, vector<32x32xf32>
    %cst_6 = arith.constant dense<0.000000e+00> : vector<32x128xf32>
    %21 = tpu.matmul %20, %19, %cst_6 {dimension_numbers = #tpu.dot_dimension_numbers<[1], [0], [0], [1], [0, 0, 1, 1], [], []>} : vector<32x32xf32>, vector<32x128xf32>, vector<32x128xf32> -> vector<32x128xf32>
    %c0_7 = arith.constant 0 : index
    %c0_8 = arith.constant 0 : index
    %22 = vector.load %arg4[%c0_7, %c0_8] : memref<32x1xf32, #tpu.memory_space<vmem>>, vector<32x1xf32>
    %23 = vector.broadcast %22 : vector<32x1xf32> to vector<32x128xf32>
    %24 = arith.addf %21, %23 : vector<32x128xf32>
    %cst_9 = arith.constant 0.000000e+00 : f32
    %25 = vector.broadcast %cst_9 : f32 to vector<32x128xf32>
    %26 = arith.maximumf %24, %25 : vector<32x128xf32>
    %c0_10 = arith.constant 0 : index
    %c0_11 = arith.constant 0 : index
    %27 = vector.load %arg5[%c0_10, %c0_11] : memref<32x32xf32, #tpu.memory_space<vmem>>, vector<32x32xf32>
    %cst_12 = arith.constant dense<0.000000e+00> : vector<32x128xf32>
    %28 = tpu.matmul %27, %26, %cst_12 {dimension_numbers = #tpu.dot_dimension_numbers<[1], [0], [0], [1], [0, 0, 1, 1], [], []>} : vector<32x32xf32>, vector<32x128xf32>, vector<32x128xf32> -> vector<32x128xf32>
    %c0_13 = arith.constant 0 : index
    %c0_14 = arith.constant 0 : index
    %29 = vector.load %arg6[%c0_13, %c0_14] : memref<32x1xf32, #tpu.memory_space<vmem>>, vector<32x1xf32>
    %30 = vector.broadcast %29 : vector<32x1xf32> to vector<32x128xf32>
    %31 = arith.addf %28, %30 : vector<32x128xf32>
    %cst_15 = arith.constant 0.000000e+00 : f32
    %32 = vector.broadcast %cst_15 : f32 to vector<32x128xf32>
    %33 = arith.maximumf %31, %32 : vector<32x128xf32>
    %c0_16 = arith.constant 0 : index
    %c0_17 = arith.constant 0 : index
    %34 = vector.load %arg7[%c0_16, %c0_17] : memref<32x1xf32, #tpu.memory_space<vmem>>, vector<32x1xf32>
    %35 = vector.broadcast %34 : vector<32x1xf32> to vector<32x128xf32>
    %36 = arith.mulf %33, %35 : vector<32x128xf32>
    %cst_18 = arith.constant dense<0.000000e+00> : vector<128xf32>
    %37 = vector.multi_reduction <add>, %36, %cst_18 [0] : vector<32x128xf32> to vector<128xf32>
    %38 = vector.shape_cast %37 : vector<128xf32> to vector<1x128xf32>
    %c0_19 = arith.constant 0 : index
    %c0_20 = arith.constant 0 : index
    %39 = vector.load %arg8[%c0_19, %c0_20] : memref<1x1xf32, #tpu.memory_space<vmem>>, vector<1x1xf32>
    %40 = vector.broadcast %39 : vector<1x1xf32> to vector<1x128xf32>
    %41 = arith.addf %38, %40 : vector<1x128xf32>
    %42 = arith.negf %41 : vector<1x128xf32>
    %43 = math.exp %42 : vector<1x128xf32>
    %cst_21 = arith.constant 1.000000e+00 : f32
    %44 = vector.broadcast %cst_21 : f32 to vector<1x128xf32>
    %45 = arith.addf %44, %43 : vector<1x128xf32>
    %46 = arith.divf %44, %45 : vector<1x128xf32>
    %c0_22 = arith.constant 0 : index
    %c0_23 = arith.constant 0 : index
    %47 = vector.load %arg9[%c0_22, %c0_23] : memref<1x128xf32, #tpu.memory_space<vmem>>, vector<1x128xf32>
    tpu.vector_store %arg9[%c0_22, %c0_23], %46 {strides = array<i32>} : memref<1x128xf32, #tpu.memory_space<vmem>>, vector<1x128xf32>,
    return
  }
  func.func @transform_0(%arg0: i32) -> (i32, i32) {
    %c0_i32 = arith.constant 0 : i32
    %c0_i32_0 = arith.constant 0 : i32
    return %c0_i32, %arg0 : i32, i32
  }
  func.func @transform_1(%arg0: i32) -> (i32, i32) {
    %c0_i32 = arith.constant 0 : i32
    %c0_i32_0 = arith.constant 0 : i32
    %c0_i32_1 = arith.constant 0 : i32
    return %c0_i32, %c0_i32_0 : i32, i32
  }
  func.func @transform_2(%arg0: i32) -> (i32, i32) {
    %c0_i32 = arith.constant 0 : i32
    %c0_i32_0 = arith.constant 0 : i32
    %c0_i32_1 = arith.constant 0 : i32
    return %c0_i32, %c0_i32_0 : i32, i32
  }
  func.func @transform_3(%arg0: i32) -> (i32, i32) {
    %c0_i32 = arith.constant 0 : i32
    %c0_i32_0 = arith.constant 0 : i32
    %c0_i32_1 = arith.constant 0 : i32
    return %c0_i32, %c0_i32_0 : i32, i32
  }
  func.func @transform_4(%arg0: i32) -> (i32, i32) {
    %c0_i32 = arith.constant 0 : i32
    %c0_i32_0 = arith.constant 0 : i32
    %c0_i32_1 = arith.constant 0 : i32
    return %c0_i32, %c0_i32_0 : i32, i32
  }
  func.func @transform_5(%arg0: i32) -> (i32, i32) {
    %c0_i32 = arith.constant 0 : i32
    %c0_i32_0 = arith.constant 0 : i32
    %c0_i32_1 = arith.constant 0 : i32
    return %c0_i32, %c0_i32_0 : i32, i32
  }
  func.func @transform_6(%arg0: i32) -> (i32, i32) {
    %c0_i32 = arith.constant 0 : i32
    %c0_i32_0 = arith.constant 0 : i32
    %c0_i32_1 = arith.constant 0 : i32
    return %c0_i32, %c0_i32_0 : i32, i32
  }
  func.func @transform_7(%arg0: i32) -> (i32, i32) {
    %c0_i32 = arith.constant 0 : i32
    %c0_i32_0 = arith.constant 0 : i32
    %c0_i32_1 = arith.constant 0 : i32
    return %c0_i32, %c0_i32_0 : i32, i32
  }
  func.func @transform_8(%arg0: i32) -> (i32, i32) {
    %c0_i32 = arith.constant 0 : i32
    %c0_i32_0 = arith.constant 0 : i32
    return %c0_i32, %arg0 : i32, i32
  }
}

</mosaic_0001>

<bundles_post_ra>
// kernel: tpu_custom_call.1
= control target key start
LH: loop header
LB: loop body
LE: loop exit
PB: predicated region body
PF: predicated region fallthrough
CT: control target
= control target key end

     0   :  { %s555_s0 = inlined_call_operand.vmem [shape: s32[2,128], index: 0, kind: input, shape index: {}]   ;;  %s556_s1 = inlined_call_operand.vmem [shape: f32[32,16], index: 1, kind: input, shape index: {}]   ;;  %s557_s2 = inlined_call_operand.vmem [shape: f32[32,32], index: 2, kind: input, shape index: {}]   ;;  %s558_s3 = inlined_call_operand.vmem [shape: f32[32,1], index: 3, kind: input, shape index: {}]   ;;  %s559_s4 = inlined_call_operand.vmem [shape: f32[32,32], index: 4, kind: input, shape index: {}]   ;;  %s560_s5 = inlined_call_operand.vmem [shape: f32[32,1], index: 5, kind: input, shape index: {}]   ;;  %s561_s6 = inlined_call_operand.vmem [shape: f32[32,1], index: 6, kind: input, shape index: {}]   ;;  %s562_s7 = inlined_call_operand.<no memory space> [shape: f32[1,1], index: 7, kind: input, shape index: {}]   ;;  %s563_s8 = inlined_call_operand.hbm [shape: f32[1,128], index: 8, kind: output, shape index: {}]  }
   0x1   :  { %v13_v0 = vstv %s562_s7 }
   0x2   :  { %14 = vst [vmem:[#allocation2] sm:$0x1] %v13_v0 }
   0x3   :  { %v36_v1 = vld [vmem:[%s555_s0] sm:$0x3]  ;;  %v37_v2 = vlaneseq }
   0x4   :  { %15 = vsyncpa [#allocation4], 0  ;;  %v40_v4 = vperm.slane %v36_v1, 0  ;;  %v47_v5 = vperm.slane %v36_v1, 1  ;;  %v418_v7 = vmov 1.0   ;;  %v32_v8 = vld [vmem:[%s556_s1] sm:$0xff] }
   0x5   :  { %v38_v3 = vshrl.u32 %v37_v2, 7  ;;  %vm54_vm4 = vcmask 130048   ;;  %v33_v9 = vld [vmem:[%s556_s1 + $0x8] sm:$0xff]  ;;  %v34_v10 = vld [vmem:[%s556_s1 + $0x10] sm:$0xff]  ;;  %v35_v11 = vld [vmem:[%s556_s1 + $0x18] sm:$0xff]  ;;  %v419_v15 = vmov 0  }
   0x6   :  { %v136_v14 = vld [vmem:[%s558_s3 + $0x18] sm:$0xff]  ;;  %385 = vset.pattern.permute.xlu0 %v419_v15  ;;  %386 = vset.pattern.permute.xlu1 %v419_v15  ;;  %v134_v18 = vld [vmem:[%s558_s3 + $0x8] sm:$0xff]  ;;  %v135_v19 = vld [vmem:[%s558_s3 + $0x10] sm:$0xff]  ;;  %vm157_vm5 = vcmask 261120  }
   0x7   :  { %v39_v6 = vadd.s32 8, %v38_v3  ;;  %vm41_vm2 = vcmp.eq.s32.totalorder %v38_v3, %v40_v4  ;;  %vm48_vm3 = vcmp.eq.s32.totalorder %v38_v3, %v47_v5  ;;  %154 = vperm.xlu0 %385, %v136_v14   ;;  %387 = vset.pattern.permute.xlu2 %v419_v15  ;;  %v133_v22 = vld [vmem:[%s558_s3] sm:$0xff]  ;;  %v209_v23 = vld [vmem:[%s560_s5 + $0x10] sm:$0xff]  ;;  %v277_v27 = vld [vmem:[%s561_s6 + $0x8] sm:$0xff]  ;;  %s348_s3 = sshll.u32 %s563_s8, 4  ;;  %s349_s3 = int_to_ptr.hbm [resolvable:$true] %s348_s3 }
   0x8   :  { %144 = vperm.xlu1 %386, %v134_v18   ;;  %v210_v28 = vld [vmem:[%s560_s5 + $0x18] sm:$0xff]  ;;  %v129_v32 = vld [vmem:[%s557_s2] sm:$0xff]  ;;  %v278_v33 = vld [vmem:[%s561_s6 + $0x10] sm:$0xff] }
   0x9   :  { %vm42_vm0 = vcmp.eq.s32.totalorder %v39_v6, %v40_v4  ;;  %vm49_vm1 = vcmp.eq.s32.totalorder %v39_v6, %v47_v5  ;;  %v313_v34 = vld [vmem:[#allocation2] sm:$0x1]  ;;  %v130_v35 = vld [vmem:[%s557_s2 + $0x8] sm:$0xff]  ;;  %v131_v36 = vld [vmem:[%s557_s2 + $0x10] sm:$0xff] }
   0xa   :  { %361 = vmatpush.msk.msra.mxu0 %vm42_vm0, %v418_v7  ;;  %367 = vmatpush.msk.msra.mxu1 %vm49_vm1, %v418_v7  ;;  %v132_v37 = vld [vmem:[%s557_s2 + $0x18] sm:$0xff]  ;;  %v207_v43 = vld [vmem:[%s560_s5] sm:$0xff]  ;;  %v208_v51 = vld [vmem:[%s560_s5 + $0x8] sm:$0xff] }
   0xb   :  { %213 = vperm.xlu2 %387, %v207_v43   ;;  %v203_v56 = vld [vmem:[%s559_s4] sm:$0xff]  ;;  %v204_v58 = vld [vmem:[%s559_s4 + $0x8] sm:$0xff]  ;;  %v279_v59 = vld [vmem:[%s561_s6 + $0x18] sm:$0xff] }
   0xc   :  { %362 = vmatpush.msk.msra.mxu0 %vm41_vm2, %v418_v7  ;;  %368 = vmatpush.msk.msra.mxu1 %vm48_vm3, %v418_v7  ;;  %v276_v57 = vld [vmem:[%s561_s6] sm:$0xff]  ;;  %v205_v60 = vld [vmem:[%s559_s4 + $0x10] sm:$0xff]  ;;  %v206_v61 = vld [vmem:[%s559_s4 + $0x18] sm:$0xff]  ;;  %s420_s4 = smov [#allocation3]  }
   0xd   :  { %363 = vmatmul.msk.f32.vlgmr.msra.gmra.mxu0 %vm54_vm4, %v32_v8  ;;  %369 = vmatmul.msk.f32.vlgmr.msra.gmra.mxu1 %vm54_vm4, %v32_v8  ;;  %s346_s6 = sshll.u32 %s420_s4, 4  ;;  %s347_s6 = int_to_ptr.vmem [resolvable:$true] %s346_s6 }
   0xf   :  { %149 = vperm.xlu0 %385, %v135_v19  }
  0x10   :  { %139 = vperm.xlu1 %386, %v133_v22  }
  0x13   :  { %218 = vperm.xlu2 %387, %v208_v51  }
  0x15   :  { %364 = vmatmul.msk.f32.gmra.mxu0 %vm54_vm4, %v33_v9  ;;  %370 = vmatmul.msk.f32.gmra.mxu1 %vm54_vm4, %v33_v9 }
  0x17   :  { %223 = vperm.xlu0 %385, %v209_v23  }
  0x18   :  { %228 = vperm.xlu1 %386, %v210_v28  }
  0x1b   :  { %282 = vperm.xlu2 %387, %v276_v57  }
  0x1d   :  { %365 = vmatmul.msk.f32.gmra.mxu0 %vm54_vm4, %v34_v10  ;;  %371 = vmatmul.msk.f32.gmra.mxu1 %vm54_vm4, %v34_v10 }
  0x1f   :  { %287 = vperm.xlu0 %385, %v277_v27  }
  0x20   :  { %292 = vperm.xlu1 %386, %v278_v33  }
  0x23   :  { %297 = vperm.xlu2 %387, %v279_v59  }
  0x25   :  { %366 = vmatmul.msk.f32.gmra.mxu0 %vm54_vm4, %v35_v11  ;;  %372 = vmatmul.msk.f32.gmra.mxu1 %vm54_vm4, %v35_v11 }
  0x27   :  { %316 = vperm.xlu0 %385, %v313_v34  }
  0x65   :  { %v214_v62 = vpop.permute.xlu2 %213 }
  0x6d   :  { %v219_v0 = vpop.permute.xlu2 %218 }
  0x75   :  { %v283_v8 = vpop.permute.xlu2 %282 }
  0x79   :  { %v155_v40 = vpop.permute.xlu0 %154 }
  0x7a   :  { %v145_v41 = vpop.permute.xlu1 %144 }
  0x81   :  { %v150_v44 = vpop.permute.xlu0 %149 }
  0x82   :  { %v140_v48 = vpop.permute.xlu1 %139 }
  0x89   :  { %v224_v2 = vpop.permute.xlu0 %223 }
  0x8a   :  { %v84_v12 = vpop.f32.mrf.mxu0  ;;  %v113_v13 = vpop.f32.mrf.mxu1 }
  0x8b   :  { %v125_v31 = vmul.f32 %v113_v13, %v84_v12  ;;  %v229_v3 = vpop.permute.xlu1 %228 }
  0x91   :  { %v288_v12 = vpop.permute.xlu0 %287 }
  0x92   :  { %v87_v16 = vpop.f32.mrf.mxu0  ;;  %v116_v17 = vpop.f32.mrf.mxu1 }
  0x93   :  { %v126_v30 = vmul.f32 %v116_v17, %v87_v16  ;;  %v293_v14 = vpop.permute.xlu1 %292 }
  0x9a   :  { %v90_v20 = vpop.f32.mrf.mxu0  ;;  %v119_v21 = vpop.f32.mrf.mxu1 }
  0x9b   :  { %v127_v29 = vmul.f32 %v119_v21, %v90_v20  ;;  %v298_v21 = vpop.permute.xlu2 %297 }
  0xa2   :  { %v93_v24 = vpop.f32.mrf.mxu0  ;;  %v122_v25 = vpop.f32.mrf.mxu1 }
  0xa3   :  { %v128_v26 = vmul.f32 %v122_v25, %v93_v24 }
  0xa5   :  { %182 = vmatpush.msra.mxu2 %v128_v26 }
  0xa7   :  { %183 = vmatpush.msra.mxu2 %v127_v29  ;;  %v317_v29 = vpop.permute.xlu0 %316 }
  0xa9   :  { %184 = vmatpush.msra.mxu2 %v126_v30 }
  0xab   :  { %185 = vmatpush.msra.mxu2 %v125_v31  ;;  %v319_v31 = vperm.slane %v317_v29, 0 }
  0xac   :  { %373 = vmatmul.msk.f32.vlgmr.msra.gmra.mxu2 %vm157_vm5, %v129_v32 }
  0xb4   :  { %374 = vmatmul.msk.f32.gmra.mxu2 %vm157_vm5, %v130_v35 }
  0xbc   :  { %375 = vmatmul.msk.f32.gmra.mxu2 %vm157_vm5, %v131_v36 }
  0xc4   :  { %376 = vmatmul.msk.f32.gmra.mxu2 %vm157_vm5, %v132_v37 }
 0x12f   :  { %v187_v38 = vpop.f32.mrf.mxu2 }
 0x130   :  { %v188_v52 = vadd.f32 %v187_v38, %v140_v48 }
 0x132   :  { %v199_v55 = vmax.f32 %v188_v52, 0.0 }
 0x137   :  { %v190_v39 = vpop.f32.mrf.mxu2 }
 0x138   :  { %v191_v49 = vadd.f32 %v190_v39, %v145_v41 }
 0x13a   :  { %v200_v54 = vmax.f32 %v191_v49, 0.0 }
 0x13f   :  { %v193_v42 = vpop.f32.mrf.mxu2 }
 0x140   :  { %v194_v46 = vadd.f32 %v193_v42, %v150_v44 }
 0x142   :  { %v201_v53 = vmax.f32 %v194_v46, 0.0 }
 0x147   :  { %v196_v45 = vpop.f32.mrf.mxu2 }
 0x148   :  { %v197_v47 = vadd.f32 %v196_v45, %v155_v40 }
 0x14a   :  { %v202_v50 = vmax.f32 %v197_v47, 0.0 }
 0x14c   :  { %255 = vmatpush.msra.mxu3 %v202_v50 }
 0x14e   :  { %256 = vmatpush.msra.mxu3 %v201_v53 }
 0x150   :  { %257 = vmatpush.msra.mxu3 %v200_v54 }
 0x152   :  { %258 = vmatpush.msra.mxu3 %v199_v55 }
 0x153   :  { %377 = vmatmul.msk.f32.vlgmr.msra.gmra.mxu3 %vm157_vm5, %v203_v56 }
 0x15b   :  { %378 = vmatmul.msk.f32.gmra.mxu3 %vm157_vm5, %v204_v58 }
 0x163   :  { %379 = vmatmul.msk.f32.gmra.mxu3 %vm157_vm5, %v205_v60 }
 0x16b   :  { %380 = vmatmul.msk.f32.gmra.mxu3 %vm157_vm5, %v206_v61 }
 0x1d6   :  { %v260_v63 = vpop.f32.mrf.mxu3 }
 0x1d7   :  { %v261_v6 = vadd.f32 %v260_v63, %v214_v62 }
 0x1d9   :  { %v272_v10 = vmax.f32 %v261_v6, 0.0 }
 0x1db   :  { %v300_v16 = vmul.f32 %v283_v8, %v272_v10 }
 0x1de   :  { %v263_v1 = vpop.f32.mrf.mxu3 }
 0x1df   :  { %v264_v4 = vadd.f32 %v263_v1, %v219_v0 }
 0x1e1   :  { %v273_v9 = vmax.f32 %v264_v4, 0.0 }
 0x1e3   :  { %v301_v13 = vmul.f32 %v288_v12, %v273_v9 }
 0x1e5   :  { %v304_v19 = vadd.f32 %v301_v13, %v300_v16 }
 0x1e6   :  { %v266_v5 = vpop.f32.mrf.mxu3 }
 0x1e7   :  { %v267_v7 = vadd.f32 %v266_v5, %v224_v2 }
 0x1e9   :  { %v274_v11 = vmax.f32 %v267_v7, 0.0 }
 0x1eb   :  { %v302_v17 = vmul.f32 %v293_v14, %v274_v11 }
 0x1ed   :  { %v305_v22 = vadd.f32 %v304_v19, %v302_v17 }
 0x1ee   :  { %v269_v15 = vpop.f32.mrf.mxu3 }
 0x1ef   :  { %v270_v18 = vadd.f32 %v269_v15, %v229_v3 }
 0x1f1   :  { %v275_v20 = vmax.f32 %v270_v18, 0.0 }
 0x1f3   :  { %v303_v23 = vmul.f32 %v298_v21, %v275_v20 }
 0x1f5   :  { %v306_v24 = vadd.f32 %v305_v22, %v303_v23 }
 0x1f7   :  { %v307_v25 = vrot.slane %v306_v24, 4 }
 0x1f9   :  { %v308_v26 = vadd.f32 %v307_v25, %v306_v24 }
 0x1fb   :  { %v309_v27 = vrot.slane %v308_v26, 2 }
 0x1fd   :  { %v310_v28 = vadd.f32 %v309_v27, %v308_v26 }
 0x1ff   :  { %v311_v30 = vrot.slane %v310_v28, 1 }
 0x201   :  { %v312_v32 = vadd.f32 %v311_v30, %v310_v28 }
 0x203   :  { %v320_v33 = vadd.f32 %v319_v31, %v312_v32 }
 0x205   :  { %v381_v34 = vmul.f32 -1.442695, %v320_v33 }
 0x207   :  { %388 = vpow2.f32 %v381_v34 }
 0x20d   :  { %v389_v35 = vpop.eup %388 }
 0x20e   :  { %v324_v36 = vadd.f32 1.0, %v389_v35 }
 0x210   :  { %390 = vrcp.f32 %v324_v36  ;;  %v336_v40 = vand.u32 2147483648, %v324_v36  ;;  %v334_v42 = vand.u32 2147483647, %v324_v36  ;;  %vm330_vm7 = vweird.f32 %v324_v36 }
 0x212   :  { %v337_v44 = vor.u32 1.1754944e-38, %v336_v40  ;;  %vm335_vm9 = vcmp.eq.f32.partialorder %v334_v42, 8.507059e+37 }
 0x216   :  { %v391_v37 = vpop.eup %390 }
 0x217   :  { %v326_v38 = vmul.f32 %v391_v37, %v324_v36  ;;  %vm331_vm6 = vweird.f32 %v391_v37 }
 0x218   :  { %vm332_vm8 = vmor %vm330_vm7, %vm331_vm6 }
 0x219   :  { %v327_v39 = vsub.f32 1.0, %v326_v38 }
 0x21b   :  { %v328_v41 = vmul.f32 %v391_v37, %v327_v39 }
 0x21d   :  { %v329_v43 = vadd.f32 %v391_v37, %v328_v41 }
 0x21f   :  { %v333_v45 = vsel %vm332_vm8, %v391_v37, %v329_v43 }
 0x220   :  { %v338_v46 = vsel %vm335_vm9, %v337_v44, %v333_v45 }
 0x221   :  { %340 = vst [vmem:[#allocation3] sm:$0x1] %v338_v46 }
 0x222   :  { %351 = dma.vmem_to_hbm [thread:$0]  %s347_s6, 16, %s349_s3, [#allocation4]  }
 0x223   :  { %416 = dma.done.wait [#allocation4], 16  }
 0x224   :  { %417 = vsyncadd [#allocation4], 4294967280 }
 0x225   :  { %356 = vsyncpa [#allocation4], 1 }

</bundles_post_ra>
